<compile_context>
chip_gen: v7x
topology: tpu7x:2x2x1
jax: 0.10.0
libtpu: 0.0.40
codegen_flags: <defaults>
</compile_context>

<pallas_src>
import math

import jax
import jax.numpy as jnp
from jax import lax
from jax.experimental import pallas as pl
from jax.experimental.pallas import tpu as pltpu

_EPS = 1e-5  # PyTorch layer_norm default

_COMPILER_PARAMS = pltpu.CompilerParams(
    dimension_semantics=("parallel",),
    vmem_limit_bytes=48 * 1024 * 1024,  # within scoped VMEM on v5e/v6e/v7x
)


def _layer_norm(y):
    """Per-sample LayerNorm over all elements (no affine), eps=1e-5, f32 stats."""
    n = y.size
    mean = jnp.sum(y) / n
    yc = y - mean
    var = jnp.sum(yc * yc) / n          # two-pass: no E[y^2]-mean^2 cancellation
    return yc * lax.rsqrt(var + _EPS)


def _fused_kernel(x_ref, w_ref, b_ref, o_ref):
    # x_ref: (bt, C, H, W)  native NCHW input tile (x read from HBM once)
    # w_ref: (4, OutC, C)   conv weight, taps stacked as t = kh*2 + kw
    # b_ref: (OutC, 1)      conv bias
    # o_ref: (bt, OutC, P)  NCHW-flat output tile, P = (H/2)*(W/2), lane-dense
    bt, C, H, W = x_ref.shape
    Ho, Wo = H // 2, W // 2
    P = Ho * Wo
    out_c = b_ref.shape[0]
    bias = b_ref[...]

    def body(i, carry):
        # Bias folded into the accumulator init; conv = 4 polyphase-tap matmuls.
        y = jnp.broadcast_to(bias, (out_c, P)).astype(jnp.float32)
        for t in range(4):
            kh, kw = divmod(t, 2)
            tap = x_ref[i, :, pl.ds(kh, Ho, 2), pl.ds(kw, Wo, 2)]   # (C, Ho, Wo)
            y = y + jnp.dot(w_ref[t], tap.reshape(C, P),
                            preferred_element_type=jnp.float32)
        o_ref[i] = _layer_norm(y).astype(o_ref.dtype)
        return carry

    lax.fori_loop(0, bt, body, 0, unroll=True)


def _im2col_kernel(p_ref, w_ref, b_ref, o_ref):
    # Fallback path (previous known-good design).
    # p_ref: (bt, K, P) im2col patches; w_ref: (OutC, K); b_ref: (OutC, 1)
    bt = p_ref.shape[0]
    w = w_ref[...]
    bias = b_ref[...]

    def body(i, carry):
        y = jnp.dot(w, p_ref[i], preferred_element_type=jnp.float32) + bias
        o_ref[i] = _layer_norm(y).astype(o_ref.dtype)
        return carry

    lax.fori_loop(0, bt, body, 0, unroll=True)


def _pick_batch_tile(B, in_bytes, out_bytes, budget_bytes=12 << 20):
    """Samples per grid step: double-buffered in+out tiles + f32 y temp <= budget."""
    per_sample = 2 * (in_bytes + out_bytes) + out_bytes
    bt = max(1, min(B, 8, budget_bytes // max(per_sample, 1)))
    if B >= 2:
        bt = max(1, min(bt, B // 2))   # keep >= 2 parallel steps (v7x: 2 TCs/chip)
    return bt


_use_fused = None  # feature probe: does this Mosaic build accept the strided taps?


def patch_aggregate(x, weight, bias):
    """x: (B, C, H, W) f32 NCHW.  weight: (OutC, C, 2, 2).  bias: (OutC,)."""
    global _use_fused
    B, C, H, W = x.shape
    out_c = weight.shape[0]
    assert H % 2 == 0 and W % 2 == 0
    Ho, Wo = H // 2, W // 2
    P = Ho * Wo

    b_mat = bias.reshape(out_c, 1)
    bt = _pick_batch_tile(B, C * H * W * 4, out_c * P * 4)
    grid = (pl.cdiv(B, bt),)
    out_shape = jax.ShapeDtypeStruct((B, out_c, P), x.dtype)
    out_spec = pl.BlockSpec((bt, out_c, P), lambda g: (g, 0, 0))

    def run_fused():
        # Conv weight with the 4 taps stacked: w_taps[kh*2 + kw, oc, c].
        w_taps = weight.transpose(2, 3, 0, 1).reshape(4, out_c, C)
        return pl.pallas_call(
            _fused_kernel,
            out_shape=out_shape,
            grid_spec=pltpu.PrefetchScalarGridSpec(
                num_scalar_prefetch=0,
                grid=grid,
                in_specs=[
                    pl.BlockSpec((bt, C, H, W), lambda g: (g, 0, 0, 0)),
                    pl.BlockSpec((4, out_c, C), lambda g: (0, 0, 0)),
                    pl.BlockSpec((out_c, 1), lambda g: (0, 0)),
                ],
                out_specs=out_spec),
            compiler_params=_COMPILER_PARAMS,
        )(x, w_taps, b_mat)

    def run_im2col():
        # Fallback: host-side im2col (one extra HBM read+write of x).
        K = 4 * C
        patches = x.reshape(B, C, Ho, 2, Wo, 2)
        patches = patches.transpose(0, 1, 3, 5, 2, 4).reshape(B, K, P)
        w_mat = weight.reshape(out_c, K)
        return pl.pallas_call(
            _im2col_kernel,
            out_shape=out_shape,
            grid_spec=pltpu.PrefetchScalarGridSpec(
                num_scalar_prefetch=0,
                grid=grid,
                in_specs=[
                    pl.BlockSpec((bt, K, P), lambda g: (g, 0, 0)),
                    pl.BlockSpec((out_c, K), lambda g: (0, 0)),
                    pl.BlockSpec((out_c, 1), lambda g: (0, 0)),
                ],
                out_specs=out_spec),
            compiler_params=_COMPILER_PARAMS,
        )(patches, w_mat, b_mat)

    if _use_fused is None:
        try:
            out = jax.block_until_ready(run_fused())
            _use_fused = True
        except Exception:
            _use_fused = False
            out = run_im2col()
    else:
        out = run_fused() if _use_fused else run_im2col()

    # (B, OutC, P) is already NCHW-flat: contiguous reshape only, no transpose.
    return out.reshape(B, out_c, Ho, Wo)


def init_params(key, in_channels, out_channels):
    """Deterministic Kaiming-normal conv weight (fan_in, gain=sqrt(2)) + zero bias."""
    fan_in = in_channels * 2 * 2
    std = math.sqrt(2.0) / math.sqrt(fan_in)
    weight = std * jax.random.normal(
        key, (out_channels, in_channels, 2, 2), dtype=jnp.float32)
    bias = jnp.zeros((out_channels,), dtype=jnp.float32)
    return weight, bias


def _reference(x, weight, bias):
    """Pure-JAX reference for sanity checking."""
    y = lax.conv_general_dilated(
        x, weight, window_strides=(2, 2), padding="VALID",
        dimension_numbers=("NCHW", "OIHW", "NCHW"),
        precision=lax.Precision.HIGHEST)
    y = y + bias.reshape(1, -1, 1, 1)
    mean = jnp.mean(y, axis=(1, 2, 3), keepdims=True)
    var = jnp.mean((y - mean) ** 2, axis=(1, 2, 3), keepdims=True)
    return (y - mean) * lax.rsqrt(var + _EPS)


if __name__ == "__main__":
    key = jax.random.PRNGKey(0)
    k_x, k_w = jax.random.split(key)

    B, C, H, W = 2, 4, 16, 16
    out_c = 8  # 2x channel enlargement, as in CMT stages

    x = jax.random.normal(k_x, (B, C, H, W), dtype=jnp.float32)
    weight, bias = init_params(k_w, C, out_c)

    out = jax.block_until_ready(patch_aggregate(x, weight, bias))

    ref = _reference(x, weight, bias)
    assert out.shape == (B, out_c, H // 2, W // 2)
    assert jnp.allclose(out, ref, atol=1e-3, rtol=1e-3), float(
        jnp.max(jnp.abs(out - ref)))

    print("KERNEL_OK")
</pallas_src>

<mosaic_0001>
module attributes {stable_mosaic.version = 11 : i64} {
  func.func @_fused_kernel(%arg0: i32, %arg1: memref<1x4x16x16xf32, #tpu.memory_space<vmem>>, %arg2: memref<4x8x4xf32, #tpu.memory_space<vmem>>, %arg3: memref<8x1xf32, #tpu.memory_space<vmem>>, %arg4: memref<1x8x64xf32, #tpu.memory_space<vmem>>) attributes {dimension_semantics = [#tpu.dimension_semantics<parallel>], iteration_bounds = array<i64: 2>, scalar_prefetch = 0 : i64, scratch_operands = 0 : i64, tpu.core_type = #tpu.core_type<tc>, window_params = [{transform_indices = @transform_0, window_bounds = array<i64: 1, 4, 16, 16>}, {pipeline_mode = #tpu.pipeline_mode<synchronous>, transform_indices = @transform_1, window_bounds = array<i64: 4, 8, 4>}, {pipeline_mode = #tpu.pipeline_mode<synchronous>, transform_indices = @transform_2, window_bounds = array<i64: 8, 1>}, {transform_indices = @transform_3, window_bounds = array<i64: 1, 8, 64>}]} {
    %c0 = arith.constant 0 : index
    %c0_0 = arith.constant 0 : index
    %0 = vector.load %arg3[%c0, %c0_0] : memref<8x1xf32, #tpu.memory_space<vmem>>, vector<8x1xf32>
    %c0_i32 = arith.constant 0 : i32
    %1 = vector.shape_cast %0 : vector<8x1xf32> to vector<8x1xf32>
    %2 = vector.broadcast %1 : vector<8x1xf32> to vector<8x64xf32>
    %3 = arith.index_cast %c0_i32 : i32 to index
    %c0_1 = arith.constant 0 : index
    %c0_2 = arith.constant 0 : index
    %c0_3 = arith.constant 0 : index
    %4 = tpu.strided_load %arg1[%3, %c0_1, %c0_2, %c0_3] {strides = array<i32: 1, 1, 2, 2>} : memref<1x4x16x16xf32, #tpu.memory_space<vmem>>, vector<1x4x8x8xf32>
    %5 = vector.shape_cast %4 : vector<1x4x8x8xf32> to vector<4x8x8xf32>
    %c0_4 = arith.constant 0 : index
    %c0_5 = arith.constant 0 : index
    %c0_6 = arith.constant 0 : index
    %6 = vector.load %arg2[%c0_4, %c0_5, %c0_6] : memref<4x8x4xf32, #tpu.memory_space<vmem>>, vector<1x8x4xf32>
    %7 = vector.shape_cast %6 : vector<1x8x4xf32> to vector<8x4xf32>
    %8 = vector.shape_cast %5 : vector<4x8x8xf32> to vector<4x64xf32>
    %cst = arith.constant dense<0.000000e+00> : vector<8x64xf32>
    %9 = tpu.matmul %7, %8, %cst {dimension_numbers = #tpu.dot_dimension_numbers<[1], [0], [0], [1], [0, 0, 1, 1], [], []>} : vector<8x4xf32>, vector<4x64xf32>, vector<8x64xf32> -> vector<8x64xf32>
    %10 = arith.addf %2, %9 : vector<8x64xf32>
    %11 = arith.index_cast %c0_i32 : i32 to index
    %c0_7 = arith.constant 0 : index
    %c0_8 = arith.constant 0 : index
    %c1 = arith.constant 1 : index
    %12 = tpu.strided_load %arg1[%11, %c0_7, %c0_8, %c1] {strides = array<i32: 1, 1, 2, 2>} : memref<1x4x16x16xf32, #tpu.memory_space<vmem>>, vector<1x4x8x8xf32>
    %13 = vector.shape_cast %12 : vector<1x4x8x8xf32> to vector<4x8x8xf32>
    %c1_9 = arith.constant 1 : index
    %c0_10 = arith.constant 0 : index
    %c0_11 = arith.constant 0 : index
    %14 = vector.load %arg2[%c1_9, %c0_10, %c0_11] : memref<4x8x4xf32, #tpu.memory_space<vmem>>, vector<1x8x4xf32>
    %15 = vector.shape_cast %14 : vector<1x8x4xf32> to vector<8x4xf32>
    %16 = vector.shape_cast %13 : vector<4x8x8xf32> to vector<4x64xf32>
    %cst_12 = arith.constant dense<0.000000e+00> : vector<8x64xf32>
    %17 = tpu.matmul %15, %16, %cst_12 {dimension_numbers = #tpu.dot_dimension_numbers<[1], [0], [0], [1], [0, 0, 1, 1], [], []>} : vector<8x4xf32>, vector<4x64xf32>, vector<8x64xf32> -> vector<8x64xf32>
    %18 = arith.addf %10, %17 : vector<8x64xf32>
    %19 = arith.index_cast %c0_i32 : i32 to index
    %c0_13 = arith.constant 0 : index
    %c1_14 = arith.constant 1 : index
    %c0_15 = arith.constant 0 : index
    %20 = tpu.strided_load %arg1[%19, %c0_13, %c1_14, %c0_15] {strides = array<i32: 1, 1, 2, 2>} : memref<1x4x16x16xf32, #tpu.memory_space<vmem>>, vector<1x4x8x8xf32>
    %21 = vector.shape_cast %20 : vector<1x4x8x8xf32> to vector<4x8x8xf32>
    %c2 = arith.constant 2 : index
    %c0_16 = arith.constant 0 : index
    %c0_17 = arith.constant 0 : index
    %22 = vector.load %arg2[%c2, %c0_16, %c0_17] : memref<4x8x4xf32, #tpu.memory_space<vmem>>, vector<1x8x4xf32>
    %23 = vector.shape_cast %22 : vector<1x8x4xf32> to vector<8x4xf32>
    %24 = vector.shape_cast %21 : vector<4x8x8xf32> to vector<4x64xf32>
    %cst_18 = arith.constant dense<0.000000e+00> : vector<8x64xf32>
    %25 = tpu.matmul %23, %24, %cst_18 {dimension_numbers = #tpu.dot_dimension_numbers<[1], [0], [0], [1], [0, 0, 1, 1], [], []>} : vector<8x4xf32>, vector<4x64xf32>, vector<8x64xf32> -> vector<8x64xf32>
    %26 = arith.addf %18, %25 : vector<8x64xf32>
    %27 = arith.index_cast %c0_i32 : i32 to index
    %c0_19 = arith.constant 0 : index
    %c1_20 = arith.constant 1 : index
    %c1_21 = arith.constant 1 : index
    %28 = tpu.strided_load %arg1[%27, %c0_19, %c1_20, %c1_21] {strides = array<i32: 1, 1, 2, 2>} : memref<1x4x16x16xf32, #tpu.memory_space<vmem>>, vector<1x4x8x8xf32>
    %29 = vector.shape_cast %28 : vector<1x4x8x8xf32> to vector<4x8x8xf32>
    %c3 = arith.constant 3 : index
    %c0_22 = arith.constant 0 : index
    %c0_23 = arith.constant 0 : index
    %30 = vector.load %arg2[%c3, %c0_22, %c0_23] : memref<4x8x4xf32, #tpu.memory_space<vmem>>, vector<1x8x4xf32>
    %31 = vector.shape_cast %30 : vector<1x8x4xf32> to vector<8x4xf32>
    %32 = vector.shape_cast %29 : vector<4x8x8xf32> to vector<4x64xf32>
    %cst_24 = arith.constant dense<0.000000e+00> : vector<8x64xf32>
    %33 = tpu.matmul %31, %32, %cst_24 {dimension_numbers = #tpu.dot_dimension_numbers<[1], [0], [0], [1], [0, 0, 1, 1], [], []>} : vector<8x4xf32>, vector<4x64xf32>, vector<8x64xf32> -> vector<8x64xf32>
    %34 = arith.addf %26, %33 : vector<8x64xf32>
    %35 = vector.shape_cast %34 : vector<8x64xf32> to vector<1x8x64xf32>
    %cst_25 = arith.constant dense<0.000000e+00> : vector<1xf32>
    %36 = vector.multi_reduction <add>, %35, %cst_25 [1, 2] : vector<1x8x64xf32> to vector<1xf32>
    %37 = vector.shape_cast %36 : vector<1xf32> to vector<1x1x1xf32>
    %38 = vector.extract %37[0, 0, 0] : f32 from vector<1x1x1xf32>
    %cst_26 = arith.constant 5.120000e+02 : f32
    %39 = arith.divf %38, %cst_26 : f32
    %40 = vector.broadcast %39 : f32 to vector<8x64xf32>
    %41 = arith.subf %34, %40 : vector<8x64xf32>
    %42 = arith.mulf %41, %41 : vector<8x64xf32>
    %43 = vector.shape_cast %42 : vector<8x64xf32> to vector<1x8x64xf32>
    %cst_27 = arith.constant dense<0.000000e+00> : vector<1xf32>
    %44 = vector.multi_reduction <add>, %43, %cst_27 [1, 2] : vector<1x8x64xf32> to vector<1xf32>
    %45 = vector.shape_cast %44 : vector<1xf32> to vector<1x1x1xf32>
    %46 = vector.extract %45[0, 0, 0] : f32 from vector<1x1x1xf32>
    %cst_28 = arith.constant 5.120000e+02 : f32
    %47 = arith.divf %46, %cst_28 : f32
    %cst_29 = arith.constant 9.99999974E-6 : f32
    %48 = arith.addf %47, %cst_29 : f32
    %49 = math.rsqrt %48 : f32
    %50 = vector.broadcast %49 : f32 to vector<8x64xf32>
    %51 = arith.mulf %41, %50 : vector<8x64xf32>
    %52 = arith.index_cast %c0_i32 : i32 to index
    %c0_30 = arith.constant 0 : index
    %c0_31 = arith.constant 0 : index
    %53 = vector.load %arg4[%52, %c0_30, %c0_31] : memref<1x8x64xf32, #tpu.memory_space<vmem>>, vector<1x8x64xf32>
    %54 = vector.shape_cast %53 : vector<1x8x64xf32> to vector<8x64xf32>
    %55 = vector.shape_cast %51 : vector<8x64xf32> to vector<1x8x64xf32>
    tpu.vector_store %arg4[%52, %c0_30, %c0_31], %55 {strides = array<i32>} : memref<1x8x64xf32, #tpu.memory_space<vmem>>, vector<1x8x64xf32>,
    %c1_i32 = arith.constant 1 : i32
    return
  }
  func.func @transform_0(%arg0: i32) -> (i32, i32, i32, i32) {
    %c0_i32 = arith.constant 0 : i32
    %c0_i32_0 = arith.constant 0 : i32
    %c0_i32_1 = arith.constant 0 : i32
    %c0_i32_2 = arith.constant 0 : i32
    return %arg0, %c0_i32, %c0_i32_0, %c0_i32_1 : i32, i32, i32, i32
  }
  func.func @transform_1(%arg0: i32) -> (i32, i32, i32) {
    %c0_i32 = arith.constant 0 : i32
    %c0_i32_0 = arith.constant 0 : i32
    %c0_i32_1 = arith.constant 0 : i32
    %c0_i32_2 = arith.constant 0 : i32
    return %c0_i32, %c0_i32_0, %c0_i32_1 : i32, i32, i32
  }
  func.func @transform_2(%arg0: i32) -> (i32, i32) {
    %c0_i32 = arith.constant 0 : i32
    %c0_i32_0 = arith.constant 0 : i32
    %c0_i32_1 = arith.constant 0 : i32
    return %c0_i32, %c0_i32_0 : i32, i32
  }
  func.func @transform_3(%arg0: i32) -> (i32, i32, i32) {
    %c0_i32 = arith.constant 0 : i32
    %c0_i32_0 = arith.constant 0 : i32
    %c0_i32_1 = arith.constant 0 : i32
    return %arg0, %c0_i32, %c0_i32_0 : i32, i32, i32
  }
}

module attributes {stable_mosaic.version = 11 : i64} {
  func.func @_im2col_kernel(%arg0: i32, %arg1: memref<1x16x64xf32, #tpu.memory_space<vmem>>, %arg2: memref<8x16xf32, #tpu.memory_space<vmem>>, %arg3: memref<8x1xf32, #tpu.memory_space<vmem>>, %arg4: memref<1x8x64xf32, #tpu.memory_space<vmem>>) attributes {dimension_semantics = [#tpu.dimension_semantics<parallel>], iteration_bounds = array<i64: 2>, scalar_prefetch = 0 : i64, scratch_operands = 0 : i64, tpu.core_type = #tpu.core_type<tc>, window_params = [{transform_indices = @transform_0, window_bounds = array<i64: 1, 16, 64>}, {pipeline_mode = #tpu.pipeline_mode<synchronous>, transform_indices = @transform_1, window_bounds = array<i64: 8, 16>}, {pipeline_mode = #tpu.pipeline_mode<synchronous>, transform_indices = @transform_2, window_bounds = array<i64: 8, 1>}, {transform_indices = @transform_3, window_bounds = array<i64: 1, 8, 64>}]} {
    %c0 = arith.constant 0 : index
    %c0_0 = arith.constant 0 : index
    %0 = vector.load %arg2[%c0, %c0_0] : memref<8x16xf32, #tpu.memory_space<vmem>>, vector<8x16xf32>
    %c0_1 = arith.constant 0 : index
    %c0_2 = arith.constant 0 : index
    %1 = vector.load %arg3[%c0_1, %c0_2] : memref<8x1xf32, #tpu.memory_space<vmem>>, vector<8x1xf32>
    %c0_i32 = arith.constant 0 : i32
    %2 = arith.index_cast %c0_i32 : i32 to index
    %c0_3 = arith.constant 0 : index
    %c0_4 = arith.constant 0 : index
    %3 = vector.load %arg1[%2, %c0_3, %c0_4] : memref<1x16x64xf32, #tpu.memory_space<vmem>>, vector<1x16x64xf32>
    %4 = vector.shape_cast %3 : vector<1x16x64xf32> to vector<16x64xf32>
    %cst = arith.constant dense<0.000000e+00> : vector<8x64xf32>
    %5 = tpu.matmul %0, %4, %cst {dimension_numbers = #tpu.dot_dimension_numbers<[1], [0], [0], [1], [0, 0, 1, 1], [], []>} : vector<8x16xf32>, vector<16x64xf32>, vector<8x64xf32> -> vector<8x64xf32>
    %6 = vector.broadcast %1 : vector<8x1xf32> to vector<8x64xf32>
    %7 = arith.addf %5, %6 : vector<8x64xf32>
    %8 = vector.shape_cast %7 : vector<8x64xf32> to vector<1x8x64xf32>
    %cst_5 = arith.constant dense<0.000000e+00> : vector<1xf32>
    %9 = vector.multi_reduction <add>, %8, %cst_5 [1, 2] : vector<1x8x64xf32> to vector<1xf32>
    %10 = vector.shape_cast %9 : vector<1xf32> to vector<1x1x1xf32>
    %11 = vector.extract %10[0, 0, 0] : f32 from vector<1x1x1xf32>
    %cst_6 = arith.constant 5.120000e+02 : f32
    %12 = arith.divf %11, %cst_6 : f32
    %13 = vector.broadcast %12 : f32 to vector<8x64xf32>
    %14 = arith.subf %7, %13 : vector<8x64xf32>
    %15 = arith.mulf %14, %14 : vector<8x64xf32>
    %16 = vector.shape_cast %15 : vector<8x64xf32> to vector<1x8x64xf32>
    %cst_7 = arith.constant dense<0.000000e+00> : vector<1xf32>
    %17 = vector.multi_reduction <add>, %16, %cst_7 [1, 2] : vector<1x8x64xf32> to vector<1xf32>
    %18 = vector.shape_cast %17 : vector<1xf32> to vector<1x1x1xf32>
    %19 = vector.extract %18[0, 0, 0] : f32 from vector<1x1x1xf32>
    %cst_8 = arith.constant 5.120000e+02 : f32
    %20 = arith.divf %19, %cst_8 : f32
    %cst_9 = arith.constant 9.99999974E-6 : f32
    %21 = arith.addf %20, %cst_9 : f32
    %22 = math.rsqrt %21 : f32
    %23 = vector.broadcast %22 : f32 to vector<8x64xf32>
    %24 = arith.mulf %14, %23 : vector<8x64xf32>
    %25 = arith.index_cast %c0_i32 : i32 to index
    %c0_10 = arith.constant 0 : index
    %c0_11 = arith.constant 0 : index
    %26 = vector.load %arg4[%25, %c0_10, %c0_11] : memref<1x8x64xf32, #tpu.memory_space<vmem>>, vector<1x8x64xf32>
    %27 = vector.shape_cast %26 : vector<1x8x64xf32> to vector<8x64xf32>
    %28 = vector.shape_cast %24 : vector<8x64xf32> to vector<1x8x64xf32>
    tpu.vector_store %arg4[%25, %c0_10, %c0_11], %28 {strides = array<i32>} : memref<1x8x64xf32, #tpu.memory_space<vmem>>, vector<1x8x64xf32>,
    %c1_i32 = arith.constant 1 : i32
    return
  }
  func.func @transform_0(%arg0: i32) -> (i32, i32, i32) {
    %c0_i32 = arith.constant 0 : i32
    %c0_i32_0 = arith.constant 0 : i32
    %c0_i32_1 = arith.constant 0 : i32
    return %arg0, %c0_i32, %c0_i32_0 : i32, i32, i32
  }
  func.func @transform_1(%arg0: i32) -> (i32, i32) {
    %c0_i32 = arith.constant 0 : i32
    %c0_i32_0 = arith.constant 0 : i32
    %c0_i32_1 = arith.constant 0 : i32
    return %c0_i32, %c0_i32_0 : i32, i32
  }
  func.func @transform_2(%arg0: i32) -> (i32, i32) {
    %c0_i32 = arith.constant 0 : i32
    %c0_i32_0 = arith.constant 0 : i32
    %c0_i32_1 = arith.constant 0 : i32
    return %c0_i32, %c0_i32_0 : i32, i32
  }
  func.func @transform_3(%arg0: i32) -> (i32, i32, i32) {
    %c0_i32 = arith.constant 0 : i32
    %c0_i32_0 = arith.constant 0 : i32
    %c0_i32_1 = arith.constant 0 : i32
    return %arg0, %c0_i32, %c0_i32_0 : i32, i32, i32
  }
}

</mosaic_0001>

<bundles_post_ra>
// kernel: tpu_custom_call.1
= control target key start
LH: loop header
LB: loop body
LE: loop exit
PB: predicated region body
PF: predicated region fallthrough
CT: control target
= control target key end

     0   :  { %8 = vsyncpa [#allocation3], 0  ;;  %s778_s0 = inlined_call_operand.hbm [shape: f32[2,16,64], index: 0, kind: input, shape index: {}]   ;;  %s779_s1 = inlined_call_operand.vmem [shape: f32[8,16], index: 1, kind: input, shape index: {}]   ;;  %s780_s2 = inlined_call_operand.vmem [shape: f32[8,1], index: 2, kind: input, shape index: {}]   ;;  %s781_s3 = inlined_call_operand.hbm [shape: f32[2,8,64], index: 3, kind: output, shape index: {}]  }
   0x1   :  { %10 = vsyncpa [#allocation3 + $0x1], 0 }
   0x2   :  { %11 = vsyncpa [#allocation4], 0 }
   0x3   :  { %13 = vsyncpa [#allocation4 + $0x1], 0  ;;  %s608_s12 = smov 0   ;;  %s610_s13 = smov 0  }
   0x4   :  { %s612_s14 = smov 0   ;;  %s614_s15 = smov 0  }
   0x5 LB: > { %s629_s16 = sadd.s32 4294967295, %s578_s15   ;;  %s393_s17 = sadd.s32 4294967294, %s578_s15   ;;  %s578_s15 = sphi %s614_s15, %s794_s15   ;;  %s574_s14 = sphi %s612_s14, %s793_s14   ;;  %s570_s13 = sphi %s610_s13, %s792_s13   ;;  %s566_s12 = sphi %s608_s12, %s791_s12  }
   0x6   : > { %s633_s18 = sadd.s32 1, %s578_s15   ;;  %s26_s19 = sadd.s32 1, %s574_s14 }
   0x7   : > { %s23_s20 = ssub.s32 %s578_s15, %s633_s18  ;;  %p33_p0 = scmp.ne.s32.totalorder %s574_s14, %s570_s13 }
   0x8   : > { %p24_p1 = scmp.eq.s32.totalorder %s23_s20, 0  ;;  %p34_p2 = scmp.eq.s32.totalorder %s578_s15, 0 }
   0x9   : > { %p39_p3 = scmp.ne.s32.totalorder %s570_s13, %s566_s12  ;;  %p40_p4 = scmp.eq.s32.totalorder %s629_s16, 0 }
   0xa   : > { %s645_s21 = scalar_select %p24_p1, %s574_s14, %s26_s19  }
   0xb   : > { %p647_p5 = por %p34_p2, %p33_p0  ;;  %p651_p6 = por %p40_p4, %p39_p3 }
   0xc   : > { %p105_p7 = scmp.eq.s32.totalorder %s629_s16, 1  ;;  %p111_p8 = scmp.eq.s32.totalorder %s393_s17, 1 }
   0xd   : > { %p439_p10 = scmp.lt.s32.totalorder %s578_s15, 2  ;;  %s137_s26 = sand.u32 1, %s574_s14  }
   0xe   : > { %p658_p11 = por %p105_p7, %p33_p0  ;;  %p662_p12 = por %p111_p8, %p39_p3 }
   0xf   : > { %s407_s27 = sshll.u32 %s578_s15, 8  ;;  %s396_s28 = sshll.u32 %s137_s26, 4 }
  0x10   : > { %s785_s24 = scalar_select %p658_p11, 1, 0 }
  0x11   : > { %s786_s25 = scalar_select %p662_p12, 1, 0 }
  0x12   : > { %s671_s4 = scalar_lea.hbm %s778_s0, %s407_s27  ;;  %s141_s5 = scalar_lea.vmem [#allocation2], %s396_s28 }
  0x13   : > { %s148_s6 = sshll.u32 %s141_s5, 4  ;;  %p675_p13 = pnand %p439_p10, %p647_p5  ;;  %s679_s6 = int_to_ptr.vmem [resolvable:$true] %s148_s6 }
  0x14   : > { %s681_s8 = scalar_lea.sflag [#allocation3], %s137_s26  ;;  %s482_s9 = scalar_lea.hbm %s671_s4, 256 }
  0x15   : > { %p483_p0 = scmp.ne.s32.totalorder %s671_s4, %s482_s9  ;;  %p484_p1 = pneg %p675_p13 }
  0x16   : > { %s487_s17 = scalar_lea.hbm %s778_s0, 512  ;;  %p488_p4 = scmp.lt.u32.totalorder %s671_s4, %s778_s0 }
  0x17   : > { %p485_p2 = pnand %p484_p1, %p483_p0  ;;  %p489_p5 = scmp.lt.u32.totalorder %s487_s17, %s482_s9 }
  0x18   : > { %p491_p8 = scmp.lt.u32.totalorder %s482_s9, %s671_s4 }
  0x19   : > { %p486_p3 = pneg %p485_p2  ;;  %p490_p7 = por %p489_p5, %p488_p4 }
  0x1b   : > { %p492_p10 = por %p491_p8, %p490_p7 }
  0x1d   : > { %p493_p9 = pnand %p492_p10, %p486_p3 }
  0x1f   : > { %496 = shalt.err (!%p493_p9)
}
  0x20   : > { %s497_s22 = scalar_lea.vmem %s679_s6, 256  ;;  %s580_s26 = smov [#allocation2]  }
  0x21   : > { %p498_p0 = scmp.ne.s32.totalorder %s679_s6, %s497_s22  ;;  %s502_s27 = sshll.u32 %s580_s26, 4  ;;  %s503_s27 = int_to_ptr.vmem [resolvable:$false] %s502_s27 }
  0x22   : > { %s504_s28 = scalar_lea.vmem %s503_s27, 512  ;;  %p505_p11 = scmp.lt.s32.totalorder %s679_s6, %s503_s27 }
  0x23   : > { %p500_p2 = pnand %p498_p0, %p484_p1  ;;  %p506_p4 = scmp.lt.s32.totalorder %s504_s28, %s497_s22 }
  0x25   : > { %p501_p12 = pneg %p500_p2  ;;  %p507_p5 = por %p506_p4, %p505_p11 }
  0x27   : > { %p508_p7 = pnand %p507_p5, %p501_p12 }
  0x29   : > { %511 = shalt.err (!%p508_p7)
}
  0x2a   : > { %s581_s29 = smov 128   ;;  %s582_s30 = smov 8  }
  0x2b   : > { %434 = dma.hbm_to_vmem [thread:$0]  (!%p675_p13), %s671_s4, 256, %s679_s6, %s681_s8, %s581_s29, %s581_s29, %s582_s30  }
  0x2c   : > { %p399_p9 = scmp.ge.s32.totalorder %s578_s15, 1  ;;  %p156_p1 = scmp.lt.s32.totalorder %s578_s15, 3 }
  0x2e   : > { %p157_p3 = pnand %p399_p9, %p156_p1 }
  0x2f   : > { %s712_s5 = sand.u32 (!%p157_p3), 1, %s570_s13  }
  0x30   : > { %160 = sbr.rel (%p157_p3) target bundleno = 777 (0x309), region = 32  ;;  %s400_s9 = sshll.u32 (!%p157_p3), %s712_s5, 4 }
  0x31   : > { %s163_s10 = scalar_lea.sflag (!%p157_p3), [#allocation3], %s712_s5  ;;  %s166_s11 = scalar_lea.vmem (!%p157_p3), [#allocation2], %s400_s9 }
  0x37   : > { %557 = dma.done.wait (%p651_p6), %s163_s10, 256  }
  0x38   : > { %559 = vsyncadd (%p651_p6), %s163_s10, 4294967040  ;;  %v583_v0 = vmov 0.0|0.0   ;;  %vm584_vm0 = vmmov 0   ;;  %v585_v1 = vmov 0.0   ;;  %v586_v2 = vmov 0   ;;  %v191_v3 = vld [vmem:[%s166_s11] sm:$0xff] }
  0x39   : > { %418 = vmatprep.subr.bf16.mxu0 %v583_v0  ;;  %415 = vmatprep.mubr.msk.f32.mxu0 %vm584_vm0, %v585_v1  ;;  %v192_v4 = vld [vmem:[%s166_s11 + $0x8] sm:$0xff]  ;;  %v190_v6 = vld [vmem:[%s780_s2] sm:$0xff]  ;;  %vm198_vm1 = vcmask 130048   ;;  %vm272_vm2 = vcmask 523264   ;;  %s401_s26 = sshll.u32 %s712_s5, 3  ;;  %s404_s27 = sshll.u32 %s629_s16, 7 }
  0x3a   : > { %479 = vset.pattern.permute.xlu0 %v586_v2  ;;  %v419_v5 = vpack.c.bf16 %v192_v4, %v191_v3  ;;  %v189_v7 = vld [vmem:[%s779_s1] sm:$0xff]  ;;  %s188_s28 = scalar_lea.vmem [#allocation5], %s401_s26  ;;  %s733_s11 = scalar_lea.hbm %s781_s3, %s404_s27 }
  0x3b   : > { %195 = vperm.xlu0 %479, %v190_v6   ;;  %s323_s29 = sshll.u32 %s188_s28, 4  ;;  %s310_s4 = scalar_lea.sflag [#allocation4], %s712_s5  ;;  %s735_s29 = int_to_ptr.vmem [resolvable:$true] %s323_s29 }
  0x3c   : > { %420 = vmatpush3.bf16.msra.mxu0 %v419_v5  ;;  %s512_s6 = scalar_lea.vmem %s735_s29, 128  ;;  %p788_p11 = scmp.ne.s32.totalorder %s785_s24, 0 }
  0x3d   : > { %p513_p6 = scmp.ne.s32.totalorder %s735_s29, %s512_s6  ;;  %s587_s16 = smov [#allocation5]  }
  0x3e   : > { %s516_s7 = sshll.u32 %s587_s16, 4  ;;  %s517_s7 = int_to_ptr.vmem [resolvable:$false] %s516_s7 }
  0x3f   : > { %416 = vmatmul.mubr.msk.f32.vlgmr.msra.gmra.mrb[0].mxu0 %vm198_vm1, %v189_v7  ;;  %p514_p12 = pnand %p513_p6, %p788_p11  ;;  %s518_s8 = scalar_lea.vmem %s517_s7, 256 }
  0x40   : > { %p519_p8 = scmp.lt.s32.totalorder %s735_s29, %s517_s7  ;;  %p520_p10 = scmp.lt.s32.totalorder %s518_s8, %s512_s6 }
  0x41   : > { %p515_p13 = pneg %p514_p12 }
  0x42   : > { %p521_p0 = por %p520_p10, %p519_p8 }
  0x44   : > { %p522_p2 = pnand %p521_p0, %p515_p13 }
  0xba   : > { %v196_v8 = vpop.permute.xlu0 %195 }
 0x112   : > { %v268_v9 = vpop.f32.mrb[0].mxu0 }
 0x113   : > { %v269_v10 = vadd.f32 %v268_v9, %v196_v8  ;;  %v417_v11 = vpop.f32.mrb[1].mxu0 }
 0x115   : > { %v273_v12 = vsel %vm272_vm2, %v269_v10, 0.0 }
 0x116   : > { %274 = vadd.xlane.f32.xlu0 %v273_v12 }
 0x1a3   : > { %v275_v13 = vpop.xlane.xlu0 %274 }
 0x1a4   : > { %v276_v14 = vrot.slane %v275_v13, 4 }
 0x1a6   : > { %v277_v15 = vadd.f32 %v276_v14, %v275_v13 }
 0x1a8   : > { %v278_v16 = vrot.slane %v277_v15, 2 }
 0x1aa   : > { %v279_v17 = vadd.f32 %v278_v16, %v277_v15 }
 0x1ac   : > { %v280_v18 = vrot.slane %v279_v17, 1 }
 0x1ae   : > { %v281_v19 = vadd.f32 %v280_v18, %v279_v17 }
 0x1b0   : > { %421 = vpush %v281_v19 }
 0x1e1   : > { %s422_s23 = spop %421 }
 0x1e2   : > { %s285_s17 = smul.f32 0.001953125, %s422_s23 }
 0x1e4   : > { %v286_v20 = vstv %s285_s17 }
 0x1e5   : > { %v287_v21 = vsub.f32 %v269_v10, %v286_v20 }
 0x1e7   : > { %v288_v22 = vmul.f32 %v287_v21, %v287_v21 }
 0x1e9   : > { %v289_v23 = vsel %vm272_vm2, %v288_v22, 0.0 }
 0x1ea   : > { %290 = vadd.xlane.f32.xlu1 %v289_v23 }
 0x277   : > { %v291_v24 = vpop.xlane.xlu1 %290 }
 0x278   : > { %v292_v25 = vrot.slane %v291_v24, 4 }
 0x27a   : > { %v293_v26 = vadd.f32 %v292_v25, %v291_v24 }
 0x27c   : > { %v294_v27 = vrot.slane %v293_v26, 2 }
 0x27e   : > { %v295_v28 = vadd.f32 %v294_v27, %v293_v26 }
 0x280   : > { %v296_v29 = vrot.slane %v295_v28, 1 }
 0x282   : > { %v297_v30 = vadd.f32 %v296_v29, %v295_v28 }
 0x284   : > { %423 = vpush %v297_v30 }
 0x2b5   : > { %s424_s19 = spop %423 }
 0x2b6   : > { %s301_s20 = smul.f32 0.001953125, %s424_s19 }
 0x2b8   : > { %s302_s22 = sadd.f32 1e-05, %s301_s20 }
 0x2ba   : > { %v303_v31 = vstv %s302_s22 }
 0x2bb   : > { %480 = vrsqrt.f32 %v303_v31 }
 0x2c5   : > { %v481_v32 = vpop.eup %480 }
 0x2c6   : > { %425 = vpush %v481_v32 }
 0x2f7   : > { %s426_s30 = spop %425 }
 0x2f8   : > { %v306_v33 = vstv %s426_s30 }
 0x2f9   : > { %v307_v34 = vmul.f32 %v306_v33, %v287_v21 }
 0x2fb   : > { %308 = vst.msk [vmem:[%s188_s28] sm:$0xff] %vm272_vm2, %v307_v34 }
 0x2fc   : > { %525 = shalt.err (!%p522_p2)
}
 0x2fd   : > { %s526_s5 = scalar_lea.hbm %s733_s11, 128  ;;  %s530_s19 = scalar_lea.hbm %s781_s3, 256 }
 0x2fe   : > { %p527_p4 = scmp.ne.s32.totalorder %s733_s11, %s526_s5  ;;  %p531_p9 = scmp.lt.u32.totalorder %s733_s11, %s781_s3 }
 0x2ff   : > { %p532_p1 = scmp.lt.u32.totalorder %s530_s19, %s526_s5  ;;  %p534_p6 = scmp.lt.u32.totalorder %s526_s5, %s733_s11 }
 0x300   : > { %p528_p5 = pnand %p527_p4, %p788_p11 }
 0x301   : > { %p533_p3 = por %p532_p1, %p531_p9 }
 0x302   : > { %p529_p7 = pneg %p528_p5 }
 0x303   : > { %p535_p12 = por %p534_p6, %p533_p3 }
 0x305   : > { %p536_p13 = pnand %p535_p12, %p529_p7 }
 0x307   : > { %539 = shalt.err (!%p536_p13)
}
 0x308   : > { %429 = dma.vmem_to_hbm [thread:$0]  (%p788_p11), %s735_s29, 128, %s733_s11, %s310_s4  }
 0x309 PF: > { %s335_s26 = sand.u32 1, %s566_s12   ;;  %p789_p8 = scmp.ne.s32.totalorder %s786_s25, 0 }
 0x30a   : > { %p790_p10 = scmp.ge.s32.totalorder %s578_s15, 2  ;;  %s336_s27 = scalar_lea.sflag [#allocation4], %s335_s26 }
 0x30c   : > { %p436_p0 = pnand %p790_p10, %p789_p8 }
 0x30e   : > { %561 = dma.done.wait (!%p436_p0), %s336_s27, 128  }
 0x30f   : > { %563 = vsyncadd (!%p436_p0), %s336_s27, 4294967168  ;;  %p16_p2 = scmp.ge.s32.totalorder %s633_s18, 4   ;;  %s791_s12 = smov %s570_s13 }
 0x310   : > { %s792_s13 = smov %s574_s14  ;;  %s793_s14 = smov %s645_s21 }
 0x311   : > { %s794_s15 = smov %s633_s18  ;;  %18 = sbr.rel (!%p16_p2) target bundleno = 5 (0x5), region = 77 }
 0x318   :  { %341 = vsyncpa [#allocation3], 1 }
 0x319   :  { %343 = vsyncpa [#allocation3 + $0x1], 1 }
 0x31a   :  { %344 = vsyncpa [#allocation4], 1 }
 0x31b   :  { %346 = vsyncpa [#allocation4 + $0x1], 1 }

</bundles_post_ra>
